<compile_context>
chip_gen: v7x
topology: tpu7x:2x2x1
jax: 0.10.0
libtpu: 0.0.40
codegen_flags: <defaults>
</compile_context>

<pallas_src>
import functools
import math

import jax
import jax.numpy as jnp
from jax.experimental import pallas as pl
from jax.experimental.pallas import tpu as pltpu

LN_EPS = 1e-5                    # PyTorch nn.LayerNorm default
VMEM_LIMIT = 48 * 1024 * 1024    # safe on v5e/v6e (128 MiB) and v7x (64 MiB)


# ------------------------------ tile helpers ------------------------------- #

def _row_tile(M):
    # sublane dim: multiple of 8, or full extent
    for t in (512, 256, 128, 64, 32, 16, 8):
        if M % t == 0:
            return t
    return M


def _q_tile(S):
    for t in (256, 128, 64, 32, 16, 8):
        if S % t == 0:
            return t
    return S


def _kv_tile(S):
    # kv tile is the lane dim of the mask/score tile: multiple of 128 or full S
    for t in (512, 256, 128):
        if S % t == 0:
            return t
    return S


def _ln(x, g, b):
    mean = jnp.mean(x, axis=-1, keepdims=True)
    xc = x - mean
    var = jnp.mean(xc * xc, axis=-1, keepdims=True)   # biased variance (torch)
    return xc * jax.lax.rsqrt(var + LN_EPS) * g + b


# ----------------------------- Pallas kernels ------------------------------ #

def ln_matmul_bias_kernel(x_ref, g_ref, b_ref, w_ref, wb_ref, o_ref):
    # fused LayerNorm(x_tile) @ W + bias   (used for the QKV projection)
    xn = _ln(x_ref[...].astype(jnp.float32), g_ref[...], b_ref[...])
    y = jnp.dot(xn, w_ref[...], preferred_element_type=jnp.float32) + wb_ref[...]
    o_ref[...] = y.astype(o_ref.dtype)


def matmul_bias_residual_kernel(x_ref, w_ref, wb_ref, r_ref, o_ref):
    # fused (x_tile @ W + bias) + residual_tile   (attention output projection)
    y = jnp.dot(x_ref[...].astype(jnp.float32), w_ref[...],
                preferred_element_type=jnp.float32) + wb_ref[...]
    o_ref[...] = (r_ref[...].astype(jnp.float32) + y).astype(o_ref.dtype)


def ln_ffn_residual_kernel(x_ref, g_ref, b_ref, w1_ref, b1_ref, w2_ref, b2_ref, o_ref):
    # fused x + W2(relu(W1(LayerNorm(x)) + b1)) + b2 ; d_ff intermediate stays in VMEM
    x = x_ref[...].astype(jnp.float32)
    xn = _ln(x, g_ref[...], b_ref[...])
    h = jnp.maximum(
        jnp.dot(xn, w1_ref[...], preferred_element_type=jnp.float32) + b1_ref[...], 0.0)
    y = jnp.dot(h, w2_ref[...], preferred_element_type=jnp.float32) + b2_ref[...]
    o_ref[...] = (x + y).astype(o_ref.dtype)


def layernorm_kernel(x_ref, g_ref, b_ref, o_ref):
    o_ref[...] = _ln(x_ref[...].astype(jnp.float32),
                     g_ref[...], b_ref[...]).astype(o_ref.dtype)


def flash_attn_kernel(q_ref, k_ref, v_ref, m_ref, o_ref, m_sc, l_sc, acc_sc):
    # grid = (B, H, q_tiles, kv_tiles); kv axis is last & "arbitrary" (reduction).
    # q_ref: (tq, Dh)  k_ref/v_ref: (tk, Dh)  m_ref: (tq|1, tk)  o_ref: (tq, Dh)
    ki = pl.program_id(3)

    @pl.when(ki == 0)
    def _():
        m_sc[...] = jnp.full_like(m_sc, -jnp.inf)
        l_sc[...] = jnp.zeros_like(l_sc)
        acc_sc[...] = jnp.zeros_like(acc_sc)

    dh = q_ref.shape[-1]
    q = q_ref[...].astype(jnp.float32) * (1.0 / math.sqrt(dh))   # pre-scale Q
    k = k_ref[...].astype(jnp.float32)
    v = v_ref[...].astype(jnp.float32)
    # scores for this (tq, tk) tile only — full [S,S] never materialized
    s = jax.lax.dot_general(q, k, (((1,), (1,)), ((), ())),
                            preferred_element_type=jnp.float32)
    s = jnp.where(m_ref[...] == 0.0, -1e9, s)   # masked_fill(mask==0, -1e9)

    m_prev = m_sc[...]
    m_new = jnp.maximum(m_prev, jnp.max(s, axis=-1, keepdims=True))
    alpha = jnp.exp(m_prev - m_new)
    p = jnp.exp(s - m_new)
    l_sc[...] = alpha * l_sc[...] + jnp.sum(p, axis=-1, keepdims=True)
    acc_sc[...] = alpha * acc_sc[...] + jnp.dot(p, v, preferred_element_type=jnp.float32)
    m_sc[...] = m_new

    @pl.when(ki == pl.num_programs(3) - 1)
    def _():
        o_ref[...] = (acc_sc[...] / l_sc[...]).astype(o_ref.dtype)


# ------------------------------ op wrappers -------------------------------- #

def _cp_rows():
    return pltpu.CompilerParams(dimension_semantics=("parallel",),
                                vmem_limit_bytes=VMEM_LIMIT)


def ln_linear(x2d, g, b, w, wb):
    """LayerNorm(x) @ w + wb, row-tiled."""
    M, D = x2d.shape
    N = w.shape[1]
    tm = _row_tile(M)
    return pl.pallas_call(
        ln_matmul_bias_kernel,
        out_shape=jax.ShapeDtypeStruct((M, N), x2d.dtype),
        grid=(M // tm,),
        in_specs=[
            pl.BlockSpec((tm, D), lambda i: (i, 0)),
            pl.BlockSpec((1, D), lambda i: (0, 0)),
            pl.BlockSpec((1, D), lambda i: (0, 0)),
            pl.BlockSpec((D, N), lambda i: (0, 0)),
            pl.BlockSpec((1, N), lambda i: (0, 0)),
        ],
        out_specs=pl.BlockSpec((tm, N), lambda i: (i, 0)),
        compiler_params=_cp_rows(),
    )(x2d, g.reshape(1, D), b.reshape(1, D), w, wb.reshape(1, N))


def linear_residual(x2d, w, wb, resid):
    """(x @ w + wb) + resid, row-tiled."""
    M, D = x2d.shape
    N = w.shape[1]
    tm = _row_tile(M)
    return pl.pallas_call(
        matmul_bias_residual_kernel,
        out_shape=jax.ShapeDtypeStruct((M, N), x2d.dtype),
        grid=(M // tm,),
        in_specs=[
            pl.BlockSpec((tm, D), lambda i: (i, 0)),
            pl.BlockSpec((D, N), lambda i: (0, 0)),
            pl.BlockSpec((1, N), lambda i: (0, 0)),
            pl.BlockSpec((tm, N), lambda i: (i, 0)),
        ],
        out_specs=pl.BlockSpec((tm, N), lambda i: (i, 0)),
        compiler_params=_cp_rows(),
    )(x2d, w, wb.reshape(1, N), resid)


def ffn_residual(x2d, g, b, w1, b1, w2, b2):
    """x + W2(relu(W1(LN(x)))), fully fused, row-tiled."""
    M, D = x2d.shape
    F = w1.shape[1]
    tm = _row_tile(M)
    # TODO(synk): for very large d_ff, chunk w1/w2 along F with an in-kernel loop
    # instead of holding both weights fully resident in VMEM.
    return pl.pallas_call(
        ln_ffn_residual_kernel,
        out_shape=jax.ShapeDtypeStruct((M, D), x2d.dtype),
        grid=(M // tm,),
        in_specs=[
            pl.BlockSpec((tm, D), lambda i: (i, 0)),
            pl.BlockSpec((1, D), lambda i: (0, 0)),
            pl.BlockSpec((1, D), lambda i: (0, 0)),
            pl.BlockSpec((D, F), lambda i: (0, 0)),
            pl.BlockSpec((1, F), lambda i: (0, 0)),
            pl.BlockSpec((F, D), lambda i: (0, 0)),
            pl.BlockSpec((1, D), lambda i: (0, 0)),
        ],
        out_specs=pl.BlockSpec((tm, D), lambda i: (i, 0)),
        compiler_params=_cp_rows(),
    )(x2d, g.reshape(1, D), b.reshape(1, D), w1, b1.reshape(1, F), w2, b2.reshape(1, D))


def layer_norm(x2d, g, b):
    M, D = x2d.shape
    tm = _row_tile(M)
    return pl.pallas_call(
        layernorm_kernel,
        out_shape=jax.ShapeDtypeStruct((M, D), x2d.dtype),
        grid=(M // tm,),
        in_specs=[
            pl.BlockSpec((tm, D), lambda i: (i, 0)),
            pl.BlockSpec((1, D), lambda i: (0, 0)),
            pl.BlockSpec((1, D), lambda i: (0, 0)),
        ],
        out_specs=pl.BlockSpec((tm, D), lambda i: (i, 0)),
        compiler_params=_cp_rows(),
    )(x2d, g.reshape(1, D), b.reshape(1, D))


def flash_attention(q, k, v, mask):
    """q,k,v: [B,H,S,Dh]; mask: [B,1,S|1,S] float (nonzero=attend, 0=masked)."""
    B, H, S, Dh = q.shape
    tq, tk = _q_tile(S), _kv_tile(S)
    nq, nk = S // tq, S // tk

    mask = mask.astype(jnp.float32)
    # Mask is never duplicated over heads in HBM; a [B,1,1,S] padding mask is
    # streamed as (1, tk) tiles (no broadcast over the query dim either).
    if mask.shape[2] == 1:
        mask_spec = pl.BlockSpec((None, None, 1, tk),
                                 lambda b, h, qi, ki: (b, 0, 0, ki))
    else:
        mask = jnp.broadcast_to(mask, (B, 1, S, S))
        mask_spec = pl.BlockSpec((None, None, tq, tk),
                                 lambda b, h, qi, ki: (b, 0, qi, ki))

    return pl.pallas_call(
        flash_attn_kernel,
        out_shape=jax.ShapeDtypeStruct((B, H, S, Dh), q.dtype),
        grid=(B, H, nq, nk),
        in_specs=[
            pl.BlockSpec((None, None, tq, Dh), lambda b, h, qi, ki: (b, h, qi, 0)),
            pl.BlockSpec((None, None, tk, Dh), lambda b, h, qi, ki: (b, h, ki, 0)),
            pl.BlockSpec((None, None, tk, Dh), lambda b, h, qi, ki: (b, h, ki, 0)),
            mask_spec,
        ],
        out_specs=pl.BlockSpec((None, None, tq, Dh), lambda b, h, qi, ki: (b, h, qi, 0)),
        scratch_shapes=[
            pltpu.VMEM((tq, 1), jnp.float32),   # running max
            pltpu.VMEM((tq, 1), jnp.float32),   # running sum
            pltpu.VMEM((tq, Dh), jnp.float32),  # output accumulator
        ],
        compiler_params=pltpu.CompilerParams(
            dimension_semantics=("parallel", "parallel", "parallel", "arbitrary"),
            vmem_limit_bytes=VMEM_LIMIT),
    )(q, k, v, mask)


# ------------------------------ encoder model ------------------------------ #

def encoder_layer(x, mask, p, num_heads):
    B, S, D = x.shape
    H = num_heads
    Dh = D // H
    x2 = x.reshape(B * S, D)

    # self-attention sublayer: x + Wo( attention( split_heads( Wqkv(LN(x)) ) ) )
    qkv = ln_linear(x2, p['ln1_g'], p['ln1_b'], p['wqkv'], p['bqkv'])   # [M, 3D]
    # TODO(synk): head split/merge transposes remain XLA copies; emitting a
    # head-major layout from the QKV kernel needs sub-128-lane output blocks.
    qkv = qkv.reshape(B, S, 3, H, Dh).transpose(2, 0, 3, 1, 4)          # [3,B,H,S,Dh]
    attn = flash_attention(qkv[0], qkv[1], qkv[2], mask)                # [B,H,S,Dh]
    attn = attn.transpose(0, 2, 1, 3).reshape(B * S, D)
    x2 = linear_residual(attn, p['wo'], p['bo'], x2)                    # + residual

    # FFN sublayer: x + W2(relu(W1(LN(x)))), one fused kernel
    x2 = ffn_residual(x2, p['ln2_g'], p['ln2_b'], p['w1'], p['b1'], p['w2'], p['b2'])
    return x2.reshape(B, S, D)


@functools.partial(jax.jit, static_argnames=("num_heads",))
def encoder_forward(x, mask, params, *, num_heads):
    for p in params['layers']:
        x = encoder_layer(x, mask, p, num_heads)
    B, S, D = x.shape
    return layer_norm(x.reshape(B * S, D),
                      params['norm_g'], params['norm_b']).reshape(B, S, D)


# ----------------------------- parameter init ------------------------------ #

def init_params(key, d_model, d_ff, num_layers, dtype=jnp.float32):
    def dense(k, din, dout):
        scale = 1.0 / math.sqrt(din)
        return (jax.random.uniform(k, (din, dout), dtype, -scale, scale),
                jnp.zeros((dout,), dtype))

    layers = []
    for li in range(num_layers):
        ks = jax.random.split(jax.random.fold_in(key, li), 6)
        wq, bq = dense(ks[0], d_model, d_model)
        wk, bk = dense(ks[1], d_model, d_model)
        wv, bv = dense(ks[2], d_model, d_model)
        wo, bo = dense(ks[3], d_model, d_model)
        w1, b1 = dense(ks[4], d_model, d_ff)
        w2, b2 = dense(ks[5], d_ff, d_model)
        layers.append(dict(
            wqkv=jnp.concatenate([wq, wk, wv], axis=1),   # fused QKV weight [D, 3D]
            bqkv=jnp.concatenate([bq, bk, bv], axis=0),   # fused QKV bias  [3D]
            wo=wo, bo=bo, w1=w1, b1=b1, w2=w2, b2=b2,
            ln1_g=jnp.ones((d_model,), dtype), ln1_b=jnp.zeros((d_model,), dtype),
            ln2_g=jnp.ones((d_model,), dtype), ln2_b=jnp.zeros((d_model,), dtype),
        ))
    return dict(layers=layers,
                norm_g=jnp.ones((d_model,), dtype),
                norm_b=jnp.zeros((d_model,), dtype))


# ---------------------------------- main ----------------------------------- #

if __name__ == "__main__":
    B, S, D, H, DFF, L = 2, 8, 32, 4, 64, 2

    key = jax.random.PRNGKey(0)
    k_x, k_p = jax.random.split(key)
    x = jax.random.normal(k_x, (B, S, D), jnp.float32)

    # padding-style mask: batch 0 attends to all 8 tokens, batch 1 to first 6
    lengths = jnp.array([8, 6])
    key_pos = jnp.arange(S)[None, :] < lengths[:, None]            # [B, S]
    mask = key_pos[:, None, None, :].astype(jnp.float32)           # [B, 1, 1, S]
    mask = jnp.broadcast_to(mask, (B, 1, S, S))                    # [B, 1, S, S]

    params = init_params(k_p, D, DFF, L)

    out = encoder_forward(x, mask, params, num_heads=H)
    jax.block_until_ready(out)
    assert out.shape == (B, S, D) and out.dtype == jnp.float32
    assert bool(jnp.all(jnp.isfinite(out)))
    print("KERNEL_OK")
</pallas_src>

<mosaic_0001>
module attributes {stable_mosaic.version = 11 : i64} {
  func.func @ln_matmul_bias_kernel(%arg0: i32, %arg1: memref<16x32xf32, #tpu.memory_space<vmem>>, %arg2: memref<1x32xf32, #tpu.memory_space<vmem>>, %arg3: memref<1x32xf32, #tpu.memory_space<vmem>>, %arg4: memref<32x96xf32, #tpu.memory_space<vmem>>, %arg5: memref<1x96xf32, #tpu.memory_space<vmem>>, %arg6: memref<16x96xf32, #tpu.memory_space<vmem>>) attributes {dimension_semantics = [#tpu.dimension_semantics<parallel>], iteration_bounds = array<i64: 1>, scalar_prefetch = 0 : i64, scratch_operands = 0 : i64, tpu.core_type = #tpu.core_type<tc>, window_params = [{transform_indices = @transform_0, window_bounds = array<i64: 16, 32>}, {pipeline_mode = #tpu.pipeline_mode<synchronous>, transform_indices = @transform_1, window_bounds = array<i64: 1, 32>}, {pipeline_mode = #tpu.pipeline_mode<synchronous>, transform_indices = @transform_2, window_bounds = array<i64: 1, 32>}, {pipeline_mode = #tpu.pipeline_mode<synchronous>, transform_indices = @transform_3, window_bounds = array<i64: 32, 96>}, {pipeline_mode = #tpu.pipeline_mode<synchronous>, transform_indices = @transform_4, window_bounds = array<i64: 1, 96>}, {transform_indices = @transform_5, window_bounds = array<i64: 16, 96>}]} {
    %c0 = arith.constant 0 : index
    %c0_0 = arith.constant 0 : index
    %0 = vector.load %arg1[%c0, %c0_0] : memref<16x32xf32, #tpu.memory_space<vmem>>, vector<16x32xf32>
    %c0_1 = arith.constant 0 : index
    %c0_2 = arith.constant 0 : index
    %1 = vector.load %arg2[%c0_1, %c0_2] : memref<1x32xf32, #tpu.memory_space<vmem>>, vector<1x32xf32>
    %c0_3 = arith.constant 0 : index
    %c0_4 = arith.constant 0 : index
    %2 = vector.load %arg3[%c0_3, %c0_4] : memref<1x32xf32, #tpu.memory_space<vmem>>, vector<1x32xf32>
    %cst = arith.constant dense<0.000000e+00> : vector<16xf32>
    %3 = vector.multi_reduction <add>, %0, %cst [1] : vector<16x32xf32> to vector<16xf32>
    %4 = vector.shape_cast %3 : vector<16xf32> to vector<16x1xf32>
    %cst_5 = arith.constant 3.200000e+01 : f32
    %5 = vector.broadcast %cst_5 : f32 to vector<16x1xf32>
    %6 = arith.divf %4, %5 : vector<16x1xf32>
    %7 = vector.broadcast %6 : vector<16x1xf32> to vector<16x32xf32>
    %8 = arith.subf %0, %7 : vector<16x32xf32>
    %9 = arith.mulf %8, %8 : vector<16x32xf32>
    %cst_6 = arith.constant dense<0.000000e+00> : vector<16xf32>
    %10 = vector.multi_reduction <add>, %9, %cst_6 [1] : vector<16x32xf32> to vector<16xf32>
    %11 = vector.shape_cast %10 : vector<16xf32> to vector<16x1xf32>
    %cst_7 = arith.constant 3.200000e+01 : f32
    %12 = vector.broadcast %cst_7 : f32 to vector<16x1xf32>
    %13 = arith.divf %11, %12 : vector<16x1xf32>
    %cst_8 = arith.constant 9.99999974E-6 : f32
    %14 = vector.broadcast %cst_8 : f32 to vector<16x1xf32>
    %15 = arith.addf %13, %14 : vector<16x1xf32>
    %16 = math.rsqrt %15 : vector<16x1xf32>
    %17 = vector.broadcast %16 : vector<16x1xf32> to vector<16x32xf32>
    %18 = arith.mulf %8, %17 : vector<16x32xf32>
    %19 = vector.broadcast %1 : vector<1x32xf32> to vector<16x32xf32>
    %20 = arith.mulf %18, %19 : vector<16x32xf32>
    %21 = vector.broadcast %2 : vector<1x32xf32> to vector<16x32xf32>
    %22 = arith.addf %20, %21 : vector<16x32xf32>
    %c0_9 = arith.constant 0 : index
    %c0_10 = arith.constant 0 : index
    %23 = vector.load %arg4[%c0_9, %c0_10] : memref<32x96xf32, #tpu.memory_space<vmem>>, vector<32x96xf32>
    %cst_11 = arith.constant dense<0.000000e+00> : vector<16x96xf32>
    %24 = tpu.matmul %22, %23, %cst_11 {dimension_numbers = #tpu.dot_dimension_numbers<[1], [0], [0], [1], [0, 0, 1, 1], [], []>} : vector<16x32xf32>, vector<32x96xf32>, vector<16x96xf32> -> vector<16x96xf32>
    %c0_12 = arith.constant 0 : index
    %c0_13 = arith.constant 0 : index
    %25 = vector.load %arg5[%c0_12, %c0_13] : memref<1x96xf32, #tpu.memory_space<vmem>>, vector<1x96xf32>
    %26 = vector.broadcast %25 : vector<1x96xf32> to vector<16x96xf32>
    %27 = arith.addf %24, %26 : vector<16x96xf32>
    %c0_14 = arith.constant 0 : index
    %c0_15 = arith.constant 0 : index
    %28 = vector.load %arg6[%c0_14, %c0_15] : memref<16x96xf32, #tpu.memory_space<vmem>>, vector<16x96xf32>
    tpu.vector_store %arg6[%c0_14, %c0_15], %27 {strides = array<i32>} : memref<16x96xf32, #tpu.memory_space<vmem>>, vector<16x96xf32>,
    return
  }
  func.func @transform_0(%arg0: i32) -> (i32, i32) {
    %c0_i32 = arith.constant 0 : i32
    %c0_i32_0 = arith.constant 0 : i32
    return %arg0, %c0_i32 : i32, i32
  }
  func.func @transform_1(%arg0: i32) -> (i32, i32) {
    %c0_i32 = arith.constant 0 : i32
    %c0_i32_0 = arith.constant 0 : i32
    %c0_i32_1 = arith.constant 0 : i32
    return %c0_i32, %c0_i32_0 : i32, i32
  }
  func.func @transform_2(%arg0: i32) -> (i32, i32) {
    %c0_i32 = arith.constant 0 : i32
    %c0_i32_0 = arith.constant 0 : i32
    %c0_i32_1 = arith.constant 0 : i32
    return %c0_i32, %c0_i32_0 : i32, i32
  }
  func.func @transform_3(%arg0: i32) -> (i32, i32) {
    %c0_i32 = arith.constant 0 : i32
    %c0_i32_0 = arith.constant 0 : i32
    %c0_i32_1 = arith.constant 0 : i32
    return %c0_i32, %c0_i32_0 : i32, i32
  }
  func.func @transform_4(%arg0: i32) -> (i32, i32) {
    %c0_i32 = arith.constant 0 : i32
    %c0_i32_0 = arith.constant 0 : i32
    %c0_i32_1 = arith.constant 0 : i32
    return %c0_i32, %c0_i32_0 : i32, i32
  }
  func.func @transform_5(%arg0: i32) -> (i32, i32) {
    %c0_i32 = arith.constant 0 : i32
    %c0_i32_0 = arith.constant 0 : i32
    return %arg0, %c0_i32 : i32, i32
  }
}

module attributes {stable_mosaic.version = 11 : i64} {
  func.func @flash_attn_kernel(%arg0: i32, %arg1: i32, %arg2: i32, %arg3: i32, %arg4: memref<1x1x8x8xf32, #tpu.memory_space<vmem>>, %arg5: memref<1x1x8x8xf32, #tpu.memory_space<vmem>>, %arg6: memref<1x1x8x8xf32, #tpu.memory_space<vmem>>, %arg7: memref<1x1x8x8xf32, #tpu.memory_space<vmem>>, %arg8: memref<1x1x8x8xf32, #tpu.memory_space<vmem>>, %arg9: memref<8x1xf32, #tpu.memory_space<vmem>>, %arg10: memref<8x1xf32, #tpu.memory_space<vmem>>, %arg11: memref<8x8xf32, #tpu.memory_space<vmem>>) attributes {dimension_semantics = [#tpu.dimension_semantics<parallel>, #tpu.dimension_semantics<parallel>, #tpu.dimension_semantics<parallel>, #tpu.dimension_semantics<arbitrary>], iteration_bounds = array<i64: 2, 4, 1, 1>, scalar_prefetch = 0 : i64, scratch_operands = 3 : i64, tpu.core_type = #tpu.core_type<tc>, window_params = [{transform_indices = @transform_0, window_bounds = array<i64: 1, 1, 8, 8>}, {transform_indices = @transform_1, window_bounds = array<i64: 1, 1, 8, 8>}, {transform_indices = @transform_2, window_bounds = array<i64: 1, 1, 8, 8>}, {transform_indices = @transform_3, window_bounds = array<i64: 1, 1, 8, 8>}, {transform_indices = @transform_4, window_bounds = array<i64: 1, 1, 8, 8>}]} {
    %c0_i32 = arith.constant 0 : i32
    %0 = arith.cmpi eq, %arg3, %c0_i32 : i32
    %1 = arith.extui %0 : i1 to i32
    %c0_i32_0 = arith.constant 0 : i32
    %2 = arith.cmpi ne, %1, %c0_i32_0 : i32
    scf.if %2 {
      %cst_36 = arith.constant 0xFF800000 : f32
      %43 = vector.broadcast %cst_36 : f32 to vector<8x1xf32>
      %c0_37 = arith.constant 0 : index
      %c0_38 = arith.constant 0 : index
      %44 = vector.load %arg9[%c0_37, %c0_38] : memref<8x1xf32, #tpu.memory_space<vmem>>, vector<8x1xf32>
      tpu.vector_store %arg9[%c0_37, %c0_38], %43 {strides = array<i32>} : memref<8x1xf32, #tpu.memory_space<vmem>>, vector<8x1xf32>,
      %cst_39 = arith.constant 0.000000e+00 : f32
      %45 = vector.broadcast %cst_39 : f32 to vector<8x1xf32>
      %c0_40 = arith.constant 0 : index
      %c0_41 = arith.constant 0 : index
      %46 = vector.load %arg10[%c0_40, %c0_41] : memref<8x1xf32, #tpu.memory_space<vmem>>, vector<8x1xf32>
      tpu.vector_store %arg10[%c0_40, %c0_41], %45 {strides = array<i32>} : memref<8x1xf32, #tpu.memory_space<vmem>>, vector<8x1xf32>,
      %cst_42 = arith.constant 0.000000e+00 : f32
      %47 = vector.broadcast %cst_42 : f32 to vector<8x8xf32>
      %c0_43 = arith.constant 0 : index
      %c0_44 = arith.constant 0 : index
      %48 = vector.load %arg11[%c0_43, %c0_44] : memref<8x8xf32, #tpu.memory_space<vmem>>, vector<8x8xf32>
      tpu.vector_store %arg11[%c0_43, %c0_44], %47 {strides = array<i32>} : memref<8x8xf32, #tpu.memory_space<vmem>>, vector<8x8xf32>,
    } else {
    }
    %c0 = arith.constant 0 : index
    %c0_1 = arith.constant 0 : index
    %c0_2 = arith.constant 0 : index
    %c0_3 = arith.constant 0 : index
    %3 = vector.load %arg4[%c0, %c0_1, %c0_2, %c0_3] : memref<1x1x8x8xf32, #tpu.memory_space<vmem>>, vector<1x1x8x8xf32>
    %4 = vector.shape_cast %3 : vector<1x1x8x8xf32> to vector<8x8xf32>
    %cst = arith.constant 0.353553385 : f32
    %5 = vector.broadcast %cst : f32 to vector<8x8xf32>
    %6 = arith.mulf %4, %5 : vector<8x8xf32>
    %c0_4 = arith.constant 0 : index
    %c0_5 = arith.constant 0 : index
    %c0_6 = arith.constant 0 : index
    %c0_7 = arith.constant 0 : index
    %7 = vector.load %arg5[%c0_4, %c0_5, %c0_6, %c0_7] : memref<1x1x8x8xf32, #tpu.memory_space<vmem>>, vector<1x1x8x8xf32>
    %8 = vector.shape_cast %7 : vector<1x1x8x8xf32> to vector<8x8xf32>
    %c0_8 = arith.constant 0 : index
    %c0_9 = arith.constant 0 : index
    %c0_10 = arith.constant 0 : index
    %c0_11 = arith.constant 0 : index
    %9 = vector.load %arg6[%c0_8, %c0_9, %c0_10, %c0_11] : memref<1x1x8x8xf32, #tpu.memory_space<vmem>>, vector<1x1x8x8xf32>
    %10 = vector.shape_cast %9 : vector<1x1x8x8xf32> to vector<8x8xf32>
    %cst_12 = arith.constant dense<0.000000e+00> : vector<8x8xf32>
    %11 = tpu.matmul %6, %8, %cst_12 {dimension_numbers = #tpu.dot_dimension_numbers<[1], [1], [0], [0], [0, 0, 1, 0], [], []>} : vector<8x8xf32>, vector<8x8xf32>, vector<8x8xf32> -> vector<8x8xf32>
    %c0_13 = arith.constant 0 : index
    %c0_14 = arith.constant 0 : index
    %c0_15 = arith.constant 0 : index
    %c0_16 = arith.constant 0 : index
    %12 = vector.load %arg7[%c0_13, %c0_14, %c0_15, %c0_16] : memref<1x1x8x8xf32, #tpu.memory_space<vmem>>, vector<1x1x8x8xf32>
    %13 = vector.shape_cast %12 : vector<1x1x8x8xf32> to vector<8x8xf32>
    %cst_17 = arith.constant 0.000000e+00 : f32
    %14 = vector.broadcast %cst_17 : f32 to vector<8x8xf32>
    %15 = arith.cmpf oeq, %13, %14 : vector<8x8xf32>
    %cst_18 = arith.constant -1.000000e+09 : f32
    %16 = vector.broadcast %cst_18 : f32 to vector<8x8xf32>
    %17 = arith.select %15, %16, %11 : vector<8x8xi1>, vector<8x8xf32>
    %c0_19 = arith.constant 0 : index
    %c0_20 = arith.constant 0 : index
    %18 = vector.load %arg9[%c0_19, %c0_20] : memref<8x1xf32, #tpu.memory_space<vmem>>, vector<8x1xf32>
    %cst_21 = arith.constant dense<0xFF800000> : vector<8xf32>
    %19 = vector.multi_reduction <maximumf>, %17, %cst_21 [1] : vector<8x8xf32> to vector<8xf32>
    %20 = vector.shape_cast %19 : vector<8xf32> to vector<8x1xf32>
    %21 = arith.maximumf %18, %20 : vector<8x1xf32>
    %22 = arith.subf %18, %21 : vector<8x1xf32>
    %23 = math.exp %22 : vector<8x1xf32>
    %24 = vector.broadcast %21 : vector<8x1xf32> to vector<8x8xf32>
    %25 = arith.subf %17, %24 : vector<8x8xf32>
    %26 = math.exp %25 : vector<8x8xf32>
    %c0_22 = arith.constant 0 : index
    %c0_23 = arith.constant 0 : index
    %27 = vector.load %arg10[%c0_22, %c0_23] : memref<8x1xf32, #tpu.memory_space<vmem>>, vector<8x1xf32>
    %28 = arith.mulf %23, %27 : vector<8x1xf32>
    %cst_24 = arith.constant dense<0.000000e+00> : vector<8xf32>
    %29 = vector.multi_reduction <add>, %26, %cst_24 [1] : vector<8x8xf32> to vector<8xf32>
    %30 = vector.shape_cast %29 : vector<8xf32> to vector<8x1xf32>
    %31 = arith.addf %28, %30 : vector<8x1xf32>
    %c0_25 = arith.constant 0 : index
    %c0_26 = arith.constant 0 : index
    %32 = vector.load %arg10[%c0_25, %c0_26] : memref<8x1xf32, #tpu.memory_space<vmem>>, vector<8x1xf32>
    tpu.vector_store %arg10[%c0_25, %c0_26], %31 {strides = array<i32>} : memref<8x1xf32, #tpu.memory_space<vmem>>, vector<8x1xf32>,
    %c0_27 = arith.constant 0 : index
    %c0_28 = arith.constant 0 : index
    %33 = vector.load %arg11[%c0_27, %c0_28] : memref<8x8xf32, #tpu.memory_space<vmem>>, vector<8x8xf32>
    %34 = vector.broadcast %23 : vector<8x1xf32> to vector<8x8xf32>
    %35 = arith.mulf %34, %33 : vector<8x8xf32>
    %cst_29 = arith.constant dense<0.000000e+00> : vector<8x8xf32>
    %36 = tpu.matmul %26, %10, %cst_29 {dimension_numbers = #tpu.dot_dimension_numbers<[1], [0], [0], [1], [0, 0, 1, 1], [], []>} : vector<8x8xf32>, vector<8x8xf32>, vector<8x8xf32> -> vector<8x8xf32>
    %37 = arith.addf %35, %36 : vector<8x8xf32>
    %c0_30 = arith.constant 0 : index
    %c0_31 = arith.constant 0 : index
    %38 = vector.load %arg11[%c0_30, %c0_31] : memref<8x8xf32, #tpu.memory_space<vmem>>, vector<8x8xf32>
    tpu.vector_store %arg11[%c0_30, %c0_31], %37 {strides = array<i32>} : memref<8x8xf32, #tpu.memory_space<vmem>>, vector<8x8xf32>,
    %c0_32 = arith.constant 0 : index
    %c0_33 = arith.constant 0 : index
    %39 = vector.load %arg9[%c0_32, %c0_33] : memref<8x1xf32, #tpu.memory_space<vmem>>, vector<8x1xf32>
    tpu.vector_store %arg9[%c0_32, %c0_33], %21 {strides = array<i32>} : memref<8x1xf32, #tpu.memory_space<vmem>>, vector<8x1xf32>,
    %c0_i32_34 = arith.constant 0 : i32
    %40 = arith.cmpi eq, %arg3, %c0_i32_34 : i32
    %41 = arith.extui %40 : i1 to i32
    %c0_i32_35 = arith.constant 0 : i32
    %42 = arith.cmpi ne, %41, %c0_i32_35 : i32
    scf.if %42 {
      %c0_36 = arith.constant 0 : index
      %c0_37 = arith.constant 0 : index
      %43 = vector.load %arg11[%c0_36, %c0_37] : memref<8x8xf32, #tpu.memory_space<vmem>>, vector<8x8xf32>
      %c0_38 = arith.constant 0 : index
      %c0_39 = arith.constant 0 : index
      %44 = vector.load %arg10[%c0_38, %c0_39] : memref<8x1xf32, #tpu.memory_space<vmem>>, vector<8x1xf32>
      %45 = vector.broadcast %44 : vector<8x1xf32> to vector<8x8xf32>
      %46 = arith.divf %43, %45 : vector<8x8xf32>
      %c0_40 = arith.constant 0 : index
      %c0_41 = arith.constant 0 : index
      %c0_42 = arith.constant 0 : index
      %c0_43 = arith.constant 0 : index
      %47 = vector.load %arg8[%c0_40, %c0_41, %c0_42, %c0_43] : memref<1x1x8x8xf32, #tpu.memory_space<vmem>>, vector<1x1x8x8xf32>
      %48 = vector.shape_cast %47 : vector<1x1x8x8xf32> to vector<8x8xf32>
      %49 = vector.shape_cast %46 : vector<8x8xf32> to vector<1x1x8x8xf32>
      tpu.vector_store %arg8[%c0_40, %c0_41, %c0_42, %c0_43], %49 {strides = array<i32>} : memref<1x1x8x8xf32, #tpu.memory_space<vmem>>, vector<1x1x8x8xf32>,
    } else {
    }
    return
  }
  func.func @transform_0(%arg0: i32, %arg1: i32, %arg2: i32, %arg3: i32) -> (i32, i32, i32, i32) {
    %c0_i32 = arith.constant 0 : i32
    %c0_i32_0 = arith.constant 0 : i32
    return %arg0, %arg1, %arg2, %c0_i32 : i32, i32, i32, i32
  }
  func.func @transform_1(%arg0: i32, %arg1: i32, %arg2: i32, %arg3: i32) -> (i32, i32, i32, i32) {
    %c0_i32 = arith.constant 0 : i32
    %c0_i32_0 = arith.constant 0 : i32
    return %arg0, %arg1, %arg3, %c0_i32 : i32, i32, i32, i32
  }
  func.func @transform_2(%arg0: i32, %arg1: i32, %arg2: i32, %arg3: i32) -> (i32, i32, i32, i32) {
    %c0_i32 = arith.constant 0 : i32
    %c0_i32_0 = arith.constant 0 : i32
    return %arg0, %arg1, %arg3, %c0_i32 : i32, i32, i32, i32
  }
  func.func @transform_3(%arg0: i32, %arg1: i32, %arg2: i32, %arg3: i32) -> (i32, i32, i32, i32) {
    %c0_i32 = arith.constant 0 : i32
    %c0_i32_0 = arith.constant 0 : i32
    return %arg0, %c0_i32, %arg2, %arg3 : i32, i32, i32, i32
  }
  func.func @transform_4(%arg0: i32, %arg1: i32, %arg2: i32, %arg3: i32) -> (i32, i32, i32, i32) {
    %c0_i32 = arith.constant 0 : i32
    %c0_i32_0 = arith.constant 0 : i32
    return %arg0, %arg1, %arg2, %c0_i32 : i32, i32, i32, i32
  }
}

module attributes {stable_mosaic.version = 11 : i64} {
  func.func @matmul_bias_residual_kernel(%arg0: i32, %arg1: memref<16x32xf32, #tpu.memory_space<vmem>>, %arg2: memref<32x32xf32, #tpu.memory_space<vmem>>, %arg3: memref<1x32xf32, #tpu.memory_space<vmem>>, %arg4: memref<16x32xf32, #tpu.memory_space<vmem>>, %arg5: memref<16x32xf32, #tpu.memory_space<vmem>>) attributes {dimension_semantics = [#tpu.dimension_semantics<parallel>], iteration_bounds = array<i64: 1>, scalar_prefetch = 0 : i64, scratch_operands = 0 : i64, tpu.core_type = #tpu.core_type<tc>, window_params = [{transform_indices = @transform_0, window_bounds = array<i64: 16, 32>}, {pipeline_mode = #tpu.pipeline_mode<synchronous>, transform_indices = @transform_1, window_bounds = array<i64: 32, 32>}, {pipeline_mode = #tpu.pipeline_mode<synchronous>, transform_indices = @transform_2, window_bounds = array<i64: 1, 32>}, {transform_indices = @transform_3, window_bounds = array<i64: 16, 32>}, {transform_indices = @transform_4, window_bounds = array<i64: 16, 32>}]} {
    %c0 = arith.constant 0 : index
    %c0_0 = arith.constant 0 : index
    %0 = vector.load %arg1[%c0, %c0_0] : memref<16x32xf32, #tpu.memory_space<vmem>>, vector<16x32xf32>
    %c0_1 = arith.constant 0 : index
    %c0_2 = arith.constant 0 : index
    %1 = vector.load %arg2[%c0_1, %c0_2] : memref<32x32xf32, #tpu.memory_space<vmem>>, vector<32x32xf32>
    %cst = arith.constant dense<0.000000e+00> : vector<16x32xf32>
    %2 = tpu.matmul %0, %1, %cst {dimension_numbers = #tpu.dot_dimension_numbers<[1], [0], [0], [1], [0, 0, 1, 1], [], []>} : vector<16x32xf32>, vector<32x32xf32>, vector<16x32xf32> -> vector<16x32xf32>
    %c0_3 = arith.constant 0 : index
    %c0_4 = arith.constant 0 : index
    %3 = vector.load %arg3[%c0_3, %c0_4] : memref<1x32xf32, #tpu.memory_space<vmem>>, vector<1x32xf32>
    %4 = vector.broadcast %3 : vector<1x32xf32> to vector<16x32xf32>
    %5 = arith.addf %2, %4 : vector<16x32xf32>
    %c0_5 = arith.constant 0 : index
    %c0_6 = arith.constant 0 : index
    %6 = vector.load %arg4[%c0_5, %c0_6] : memref<16x32xf32, #tpu.memory_space<vmem>>, vector<16x32xf32>
    %7 = arith.addf %6, %5 : vector<16x32xf32>
    %c0_7 = arith.constant 0 : index
    %c0_8 = arith.constant 0 : index
    %8 = vector.load %arg5[%c0_7, %c0_8] : memref<16x32xf32, #tpu.memory_space<vmem>>, vector<16x32xf32>
    tpu.vector_store %arg5[%c0_7, %c0_8], %7 {strides = array<i32>} : memref<16x32xf32, #tpu.memory_space<vmem>>, vector<16x32xf32>,
    return
  }
  func.func @transform_0(%arg0: i32) -> (i32, i32) {
    %c0_i32 = arith.constant 0 : i32
    %c0_i32_0 = arith.constant 0 : i32
    return %arg0, %c0_i32 : i32, i32
  }
  func.func @transform_1(%arg0: i32) -> (i32, i32) {
    %c0_i32 = arith.constant 0 : i32
    %c0_i32_0 = arith.constant 0 : i32
    %c0_i32_1 = arith.constant 0 : i32
    return %c0_i32, %c0_i32_0 : i32, i32
  }
  func.func @transform_2(%arg0: i32) -> (i32, i32) {
    %c0_i32 = arith.constant 0 : i32
    %c0_i32_0 = arith.constant 0 : i32
    %c0_i32_1 = arith.constant 0 : i32
    return %c0_i32, %c0_i32_0 : i32, i32
  }
  func.func @transform_3(%arg0: i32) -> (i32, i32) {
    %c0_i32 = arith.constant 0 : i32
    %c0_i32_0 = arith.constant 0 : i32
    return %arg0, %c0_i32 : i32, i32
  }
  func.func @transform_4(%arg0: i32) -> (i32, i32) {
    %c0_i32 = arith.constant 0 : i32
    %c0_i32_0 = arith.constant 0 : i32
    return %arg0, %c0_i32 : i32, i32
  }
}

module attributes {stable_mosaic.version = 11 : i64} {
  func.func @ln_ffn_residual_kernel(%arg0: i32, %arg1: memref<16x32xf32, #tpu.memory_space<vmem>>, %arg2: memref<1x32xf32, #tpu.memory_space<vmem>>, %arg3: memref<1x32xf32, #tpu.memory_space<vmem>>, %arg4: memref<32x64xf32, #tpu.memory_space<vmem>>, %arg5: memref<1x64xf32, #tpu.memory_space<vmem>>, %arg6: memref<64x32xf32, #tpu.memory_space<vmem>>, %arg7: memref<1x32xf32, #tpu.memory_space<vmem>>, %arg8: memref<16x32xf32, #tpu.memory_space<vmem>>) attributes {dimension_semantics = [#tpu.dimension_semantics<parallel>], iteration_bounds = array<i64: 1>, scalar_prefetch = 0 : i64, scratch_operands = 0 : i64, tpu.core_type = #tpu.core_type<tc>, window_params = [{transform_indices = @transform_0, window_bounds = array<i64: 16, 32>}, {pipeline_mode = #tpu.pipeline_mode<synchronous>, transform_indices = @transform_1, window_bounds = array<i64: 1, 32>}, {pipeline_mode = #tpu.pipeline_mode<synchronous>, transform_indices = @transform_2, window_bounds = array<i64: 1, 32>}, {pipeline_mode = #tpu.pipeline_mode<synchronous>, transform_indices = @transform_3, window_bounds = array<i64: 32, 64>}, {pipeline_mode = #tpu.pipeline_mode<synchronous>, transform_indices = @transform_4, window_bounds = array<i64: 1, 64>}, {pipeline_mode = #tpu.pipeline_mode<synchronous>, transform_indices = @transform_5, window_bounds = array<i64: 64, 32>}, {pipeline_mode = #tpu.pipeline_mode<synchronous>, transform_indices = @transform_6, window_bounds = array<i64: 1, 32>}, {transform_indices = @transform_7, window_bounds = array<i64: 16, 32>}]} {
    %c0 = arith.constant 0 : index
    %c0_0 = arith.constant 0 : index
    %0 = vector.load %arg1[%c0, %c0_0] : memref<16x32xf32, #tpu.memory_space<vmem>>, vector<16x32xf32>
    %c0_1 = arith.constant 0 : index
    %c0_2 = arith.constant 0 : index
    %1 = vector.load %arg2[%c0_1, %c0_2] : memref<1x32xf32, #tpu.memory_space<vmem>>, vector<1x32xf32>
    %c0_3 = arith.constant 0 : index
    %c0_4 = arith.constant 0 : index
    %2 = vector.load %arg3[%c0_3, %c0_4] : memref<1x32xf32, #tpu.memory_space<vmem>>, vector<1x32xf32>
    %cst = arith.constant dense<0.000000e+00> : vector<16xf32>
    %3 = vector.multi_reduction <add>, %0, %cst [1] : vector<16x32xf32> to vector<16xf32>
    %4 = vector.shape_cast %3 : vector<16xf32> to vector<16x1xf32>
    %cst_5 = arith.constant 3.200000e+01 : f32
    %5 = vector.broadcast %cst_5 : f32 to vector<16x1xf32>
    %6 = arith.divf %4, %5 : vector<16x1xf32>
    %7 = vector.broadcast %6 : vector<16x1xf32> to vector<16x32xf32>
    %8 = arith.subf %0, %7 : vector<16x32xf32>
    %9 = arith.mulf %8, %8 : vector<16x32xf32>
    %cst_6 = arith.constant dense<0.000000e+00> : vector<16xf32>
    %10 = vector.multi_reduction <add>, %9, %cst_6 [1] : vector<16x32xf32> to vector<16xf32>
    %11 = vector.shape_cast %10 : vector<16xf32> to vector<16x1xf32>
    %cst_7 = arith.constant 3.200000e+01 : f32
    %12 = vector.broadcast %cst_7 : f32 to vector<16x1xf32>
    %13 = arith.divf %11, %12 : vector<16x1xf32>
    %cst_8 = arith.constant 9.99999974E-6 : f32
    %14 = vector.broadcast %cst_8 : f32 to vector<16x1xf32>
    %15 = arith.addf %13, %14 : vector<16x1xf32>
    %16 = math.rsqrt %15 : vector<16x1xf32>
    %17 = vector.broadcast %16 : vector<16x1xf32> to vector<16x32xf32>
    %18 = arith.mulf %8, %17 : vector<16x32xf32>
    %19 = vector.broadcast %1 : vector<1x32xf32> to vector<16x32xf32>
    %20 = arith.mulf %18, %19 : vector<16x32xf32>
    %21 = vector.broadcast %2 : vector<1x32xf32> to vector<16x32xf32>
    %22 = arith.addf %20, %21 : vector<16x32xf32>
    %c0_9 = arith.constant 0 : index
    %c0_10 = arith.constant 0 : index
    %23 = vector.load %arg4[%c0_9, %c0_10] : memref<32x64xf32, #tpu.memory_space<vmem>>, vector<32x64xf32>
    %cst_11 = arith.constant dense<0.000000e+00> : vector<16x64xf32>
    %24 = tpu.matmul %22, %23, %cst_11 {dimension_numbers = #tpu.dot_dimension_numbers<[1], [0], [0], [1], [0, 0, 1, 1], [], []>} : vector<16x32xf32>, vector<32x64xf32>, vector<16x64xf32> -> vector<16x64xf32>
    %c0_12 = arith.constant 0 : index
    %c0_13 = arith.constant 0 : index
    %25 = vector.load %arg5[%c0_12, %c0_13] : memref<1x64xf32, #tpu.memory_space<vmem>>, vector<1x64xf32>
    %26 = vector.broadcast %25 : vector<1x64xf32> to vector<16x64xf32>
    %27 = arith.addf %24, %26 : vector<16x64xf32>
    %cst_14 = arith.constant 0.000000e+00 : f32
    %28 = vector.broadcast %cst_14 : f32 to vector<16x64xf32>
    %29 = arith.maximumf %27, %28 : vector<16x64xf32>
    %c0_15 = arith.constant 0 : index
    %c0_16 = arith.constant 0 : index
    %30 = vector.load %arg6[%c0_15, %c0_16] : memref<64x32xf32, #tpu.memory_space<vmem>>, vector<64x32xf32>
    %cst_17 = arith.constant dense<0.000000e+00> : vector<16x32xf32>
    %31 = tpu.matmul %29, %30, %cst_17 {dimension_numbers = #tpu.dot_dimension_numbers<[1], [0], [0], [1], [0, 0, 1, 1], [], []>} : vector<16x64xf32>, vector<64x32xf32>, vector<16x32xf32> -> vector<16x32xf32>
    %c0_18 = arith.constant 0 : index
    %c0_19 = arith.constant 0 : index
    %32 = vector.load %arg7[%c0_18, %c0_19] : memref<1x32xf32, #tpu.memory_space<vmem>>, vector<1x32xf32>
    %33 = vector.broadcast %32 : vector<1x32xf32> to vector<16x32xf32>
    %34 = arith.addf %31, %33 : vector<16x32xf32>
    %35 = arith.addf %0, %34 : vector<16x32xf32>
    %c0_20 = arith.constant 0 : index
    %c0_21 = arith.constant 0 : index
    %36 = vector.load %arg8[%c0_20, %c0_21] : memref<16x32xf32, #tpu.memory_space<vmem>>, vector<16x32xf32>
    tpu.vector_store %arg8[%c0_20, %c0_21], %35 {strides = array<i32>} : memref<16x32xf32, #tpu.memory_space<vmem>>, vector<16x32xf32>,
    return
  }
  func.func @transform_0(%arg0: i32) -> (i32, i32) {
    %c0_i32 = arith.constant 0 : i32
    %c0_i32_0 = arith.constant 0 : i32
    return %arg0, %c0_i32 : i32, i32
  }
  func.func @transform_1(%arg0: i32) -> (i32, i32) {
    %c0_i32 = arith.constant 0 : i32
    %c0_i32_0 = arith.constant 0 : i32
    %c0_i32_1 = arith.constant 0 : i32
    return %c0_i32, %c0_i32_0 : i32, i32
  }
  func.func @transform_2(%arg0: i32) -> (i32, i32) {
    %c0_i32 = arith.constant 0 : i32
    %c0_i32_0 = arith.constant 0 : i32
    %c0_i32_1 = arith.constant 0 : i32
    return %c0_i32, %c0_i32_0 : i32, i32
  }
  func.func @transform_3(%arg0: i32) -> (i32, i32) {
    %c0_i32 = arith.constant 0 : i32
    %c0_i32_0 = arith.constant 0 : i32
    %c0_i32_1 = arith.constant 0 : i32
    return %c0_i32, %c0_i32_0 : i32, i32
  }
  func.func @transform_4(%arg0: i32) -> (i32, i32) {
    %c0_i32 = arith.constant 0 : i32
    %c0_i32_0 = arith.constant 0 : i32
    %c0_i32_1 = arith.constant 0 : i32
    return %c0_i32, %c0_i32_0 : i32, i32
  }
  func.func @transform_5(%arg0: i32) -> (i32, i32) {
    %c0_i32 = arith.constant 0 : i32
    %c0_i32_0 = arith.constant 0 : i32
    %c0_i32_1 = arith.constant 0 : i32
    return %c0_i32, %c0_i32_0 : i32, i32
  }
  func.func @transform_6(%arg0: i32) -> (i32, i32) {
    %c0_i32 = arith.constant 0 : i32
    %c0_i32_0 = arith.constant 0 : i32
    %c0_i32_1 = arith.constant 0 : i32
    return %c0_i32, %c0_i32_0 : i32, i32
  }
  func.func @transform_7(%arg0: i32) -> (i32, i32) {
    %c0_i32 = arith.constant 0 : i32
    %c0_i32_0 = arith.constant 0 : i32
    return %arg0, %c0_i32 : i32, i32
  }
}

module attributes {stable_mosaic.version = 11 : i64} {
  func.func @layernorm_kernel(%arg0: i32, %arg1: memref<16x32xf32, #tpu.memory_space<vmem>>, %arg2: memref<1x32xf32, #tpu.memory_space<vmem>>, %arg3: memref<1x32xf32, #tpu.memory_space<vmem>>, %arg4: memref<16x32xf32, #tpu.memory_space<vmem>>) attributes {dimension_semantics = [#tpu.dimension_semantics<parallel>], iteration_bounds = array<i64: 1>, scalar_prefetch = 0 : i64, scratch_operands = 0 : i64, tpu.core_type = #tpu.core_type<tc>, window_params = [{transform_indices = @transform_0, window_bounds = array<i64: 16, 32>}, {pipeline_mode = #tpu.pipeline_mode<synchronous>, transform_indices = @transform_1, window_bounds = array<i64: 1, 32>}, {pipeline_mode = #tpu.pipeline_mode<synchronous>, transform_indices = @transform_2, window_bounds = array<i64: 1, 32>}, {transform_indices = @transform_3, window_bounds = array<i64: 16, 32>}]} {
    %c0 = arith.constant 0 : index
    %c0_0 = arith.constant 0 : index
    %0 = vector.load %arg1[%c0, %c0_0] : memref<16x32xf32, #tpu.memory_space<vmem>>, vector<16x32xf32>
    %c0_1 = arith.constant 0 : index
    %c0_2 = arith.constant 0 : index
    %1 = vector.load %arg2[%c0_1, %c0_2] : memref<1x32xf32, #tpu.memory_space<vmem>>, vector<1x32xf32>
    %c0_3 = arith.constant 0 : index
    %c0_4 = arith.constant 0 : index
    %2 = vector.load %arg3[%c0_3, %c0_4] : memref<1x32xf32, #tpu.memory_space<vmem>>, vector<1x32xf32>
    %cst = arith.constant dense<0.000000e+00> : vector<16xf32>
    %3 = vector.multi_reduction <add>, %0, %cst [1] : vector<16x32xf32> to vector<16xf32>
    %4 = vector.shape_cast %3 : vector<16xf32> to vector<16x1xf32>
    %cst_5 = arith.constant 3.200000e+01 : f32
    %5 = vector.broadcast %cst_5 : f32 to vector<16x1xf32>
    %6 = arith.divf %4, %5 : vector<16x1xf32>
    %7 = vector.broadcast %6 : vector<16x1xf32> to vector<16x32xf32>
    %8 = arith.subf %0, %7 : vector<16x32xf32>
    %9 = arith.mulf %8, %8 : vector<16x32xf32>
    %cst_6 = arith.constant dense<0.000000e+00> : vector<16xf32>
    %10 = vector.multi_reduction <add>, %9, %cst_6 [1] : vector<16x32xf32> to vector<16xf32>
    %11 = vector.shape_cast %10 : vector<16xf32> to vector<16x1xf32>
    %cst_7 = arith.constant 3.200000e+01 : f32
    %12 = vector.broadcast %cst_7 : f32 to vector<16x1xf32>
    %13 = arith.divf %11, %12 : vector<16x1xf32>
    %cst_8 = arith.constant 9.99999974E-6 : f32
    %14 = vector.broadcast %cst_8 : f32 to vector<16x1xf32>
    %15 = arith.addf %13, %14 : vector<16x1xf32>
    %16 = math.rsqrt %15 : vector<16x1xf32>
    %17 = vector.broadcast %16 : vector<16x1xf32> to vector<16x32xf32>
    %18 = arith.mulf %8, %17 : vector<16x32xf32>
    %19 = vector.broadcast %1 : vector<1x32xf32> to vector<16x32xf32>
    %20 = arith.mulf %18, %19 : vector<16x32xf32>
    %21 = vector.broadcast %2 : vector<1x32xf32> to vector<16x32xf32>
    %22 = arith.addf %20, %21 : vector<16x32xf32>
    %c0_9 = arith.constant 0 : index
    %c0_10 = arith.constant 0 : index
    %23 = vector.load %arg4[%c0_9, %c0_10] : memref<16x32xf32, #tpu.memory_space<vmem>>, vector<16x32xf32>
    tpu.vector_store %arg4[%c0_9, %c0_10], %22 {strides = array<i32>} : memref<16x32xf32, #tpu.memory_space<vmem>>, vector<16x32xf32>,
    return
  }
  func.func @transform_0(%arg0: i32) -> (i32, i32) {
    %c0_i32 = arith.constant 0 : i32
    %c0_i32_0 = arith.constant 0 : i32
    return %arg0, %c0_i32 : i32, i32
  }
  func.func @transform_1(%arg0: i32) -> (i32, i32) {
    %c0_i32 = arith.constant 0 : i32
    %c0_i32_0 = arith.constant 0 : i32
    %c0_i32_1 = arith.constant 0 : i32
    return %c0_i32, %c0_i32_0 : i32, i32
  }
  func.func @transform_2(%arg0: i32) -> (i32, i32) {
    %c0_i32 = arith.constant 0 : i32
    %c0_i32_0 = arith.constant 0 : i32
    %c0_i32_1 = arith.constant 0 : i32
    return %c0_i32, %c0_i32_0 : i32, i32
  }
  func.func @transform_3(%arg0: i32) -> (i32, i32) {
    %c0_i32 = arith.constant 0 : i32
    %c0_i32_0 = arith.constant 0 : i32
    return %arg0, %c0_i32 : i32, i32
  }
}

</mosaic_0001>

<bundles_post_ra>
// kernel: encoder_forward.9
= control target key start
LH: loop header
LB: loop body
LE: loop exit
PB: predicated region body
PF: predicated region fallthrough
CT: control target
= control target key end

     0   :  { %vm24_vm0 = vcmask 261120   ;;  %vm160_vm1 = vcmask 785408   ;;  %s270_s0 = inlined_call_operand.vmem [shape: f32[16,32], index: 0, kind: input, shape index: {}]   ;;  %s271_s3 = inlined_call_operand.vmem [shape: f32[32,96], index: 3, kind: input, shape index: {}]   ;;  %s272_s1 = inlined_call_operand.vmem [shape: f32[1,32], index: 1, kind: input, shape index: {}]   ;;  %s273_s2 = inlined_call_operand.vmem [shape: f32[1,32], index: 2, kind: input, shape index: {}]   ;;  %s274_s4 = inlined_call_operand.vmem [shape: f32[1,96], index: 4, kind: input, shape index: {}]   ;;  %s275_s5 = inlined_call_operand.vmem [shape: f32[16,96], index: 5, kind: output, shape index: {}]  }
   0x1   :  { %v20_v0 = vld [vmem:[%s270_s0] sm:$0xff]  ;;  %v21_v1 = vld [vmem:[%s270_s0 + $0x8] sm:$0xff]  ;;  %v70_v16 = vld [vmem:[%s271_s3 + $0x10] sm:$0xff] }
   0x2   :  { %v25_v2 = vsel %vm24_vm0, %v20_v0, 0.0  ;;  %v28_v3 = vsel %vm24_vm0, %v21_v1, 0.0  ;;  %v68_v14 = vld [vmem:[%s271_s3] sm:$0xff]  ;;  %v69_v15 = vld [vmem:[%s271_s3 + $0x8] sm:$0xff]  ;;  %v71_v18 = vld [vmem:[%s271_s3 + $0x18] sm:$0xff] }
   0x3   :  { %26 = vadd.xlane.f32.xlu0 %v25_v2  ;;  %v189_v17 = vpack.c.bf16 %v69_v15, %v68_v14  ;;  %v193_v19 = vpack.c.bf16 %v71_v18, %v70_v16  ;;  %v167_v27 = vld [vmem:[%s272_s1] ss:$0 sm:$0xff] }
   0x4   :  { %v168_v29 = vld [vmem:[%s273_s2] ss:$0 sm:$0xff] }
   0x5   :  { %190 = vmatprep.subr.bf16.mxu0 %v189_v17  ;;  %v169_v36 = vld [vmem:[%s274_s4] ss:$0 sm:$0xff] }
   0x6   :  { %192 = vmatpush3.bf16.msra.mxu0 %v189_v17 }
   0x7   :  { %29 = vadd.xlane.f32.xlu0 %v28_v3  ;;  %194 = vmatprep.subr.bf16.mxu0 %v193_v19 }
   0xa   :  { %196 = vmatpush3.bf16.msra.mxu0 %v193_v19 }
  0x90   :  { %v27_v4 = vpop.xlane.xlu0 %26 }
  0x91   :  { %v32_v5 = vmul.f32 0.03125, %v27_v4 }
  0x93   :  { %v34_v6 = vsub.f32 %v20_v0, %v32_v5 }
  0x94   :  { %v30_v7 = vpop.xlane.xlu0 %29 }
  0x95   :  { %v33_v8 = vmul.f32 0.03125, %v30_v7  ;;  %v36_v9 = vmul.f32 %v34_v6, %v34_v6 }
  0x97   :  { %v35_v10 = vsub.f32 %v21_v1, %v33_v8  ;;  %v38_v11 = vsel %vm24_vm0, %v36_v9, 0.0 }
  0x98   :  { %39 = vadd.xlane.f32.xlu1 %v38_v11 }
  0x99   :  { %v37_v12 = vmul.f32 %v35_v10, %v35_v10 }
  0x9b   :  { %v41_v13 = vsel %vm24_vm0, %v37_v12, 0.0 }
  0x9c   :  { %42 = vadd.xlane.f32.xlu1 %v41_v13 }
 0x125   :  { %v40_v20 = vpop.xlane.xlu1 %39 }
 0x126   :  { %v44_v21 = vmul.f32 0.03125, %v40_v20 }
 0x128   :  { %v46_v22 = vadd.f32 1e-05, %v44_v21 }
 0x129   :  { %v43_v23 = vpop.xlane.xlu1 %42 }
 0x12a   :  { %197 = vrsqrt.f32 %v46_v22  ;;  %v45_v24 = vmul.f32 0.03125, %v43_v23 }
 0x12c   :  { %v47_v25 = vadd.f32 1e-05, %v45_v24 }
 0x12e   :  { %199 = vrsqrt.f32 %v47_v25 }
 0x134   :  { %v198_v26 = vpop.eup %197 }
 0x135   :  { %v50_v28 = vmul.f32 %v198_v26, %v34_v6 }
 0x137   :  { %v58_v30 = vmul.f32 %v167_v27, %v50_v28 }
 0x138   :  { %v200_v31 = vpop.eup %199 }
 0x139   :  { %v51_v32 = vmul.f32 %v200_v31, %v35_v10  ;;  %v66_v33 = vadd.f32 %v168_v29, %v58_v30 }
 0x13b   :  { %v59_v34 = vmul.f32 %v167_v27, %v51_v32  ;;  %186 = vmatprep.mubr.msk.f32.mxu0 %vm24_vm0, %v66_v33 }
 0x13d   :  { %v67_v35 = vadd.f32 %v168_v29, %v59_v34 }
 0x13f   :  { %187 = vmatmul.mubr.msk.f32.vlgmr.msra.gmra.mrb[0].mxu0 %vm24_vm0, %v67_v35 }
 0x212   :  { %v188_v37 = vpop.f32.mrb[0].mxu0 }
 0x213   :  { %v157_v38 = vadd.f32 %v188_v37, %v169_v36  ;;  %v151_v39 = vpop.f32.mrb[1].mxu0 }
 0x214   :  { %v152_v40 = vadd.f32 %v169_v36, %v151_v39 }
 0x215   :  { %162 = vst.msk [vmem:[%s275_s5 + $0x8] sm:$0xff] %vm160_vm1, %v157_v38 }
 0x216   :  { %161 = vst.msk [vmem:[%s275_s5] sm:$0xff] %vm160_vm1, %v152_v40 }

// kernel: encoder_forward.11
= control target key start
LH: loop header
LB: loop body
LE: loop exit
PB: predicated region body
PF: predicated region fallthrough
CT: control target
= control target key end

     0   :  { %vm30_vm0 = vcmask 261120   ;;  %s212_s1 = inlined_call_operand.vmem [shape: f32[32,32], index: 1, kind: input, shape index: {}]   ;;  %s213_s0 = inlined_call_operand.vmem [shape: f32[16,32], index: 0, kind: input, shape index: {}]   ;;  %s214_s2 = inlined_call_operand.vmem [shape: f32[1,32], index: 2, kind: input, shape index: {}]   ;;  %s215_s3 = inlined_call_operand.vmem [shape: f32[16,32], index: 3, kind: input, shape index: {}]   ;;  %s216_s4 = inlined_call_operand.vmem [shape: f32[16,32], index: 4, kind: output, shape index: {}]  }
   0x1   :  { %v19_v0 = vld [vmem:[%s212_s1] sm:$0xff]  ;;  %v20_v1 = vld [vmem:[%s212_s1 + $0x8] sm:$0xff]  ;;  %v21_v2 = vld [vmem:[%s212_s1 + $0x10] sm:$0xff] }
   0x2   :  { %v142_v3 = vpack.c.bf16 %v20_v1, %v19_v0  ;;  %v22_v4 = vld [vmem:[%s212_s1 + $0x18] sm:$0xff]  ;;  %v17_v5 = vld [vmem:[%s213_s0] sm:$0xff]  ;;  %v18_v7 = vld [vmem:[%s213_s0 + $0x8] sm:$0xff] }
   0x3   :  { %v146_v6 = vpack.c.bf16 %v22_v4, %v21_v2  ;;  %139 = vmatprep.mubr.msk.f32.mxu0 %vm30_vm0, %v17_v5  ;;  %v122_v8 = vld [vmem:[%s214_s2] ss:$0 sm:$0xff]  ;;  %v113_v10 = vld [vmem:[%s215_s3 + $0x8] sm:$0xff] }
   0x4   :  { %143 = vmatprep.subr.bf16.mxu0 %v142_v3  ;;  %v112_v13 = vld [vmem:[%s215_s3] sm:$0xff] }
   0x5   :  { %145 = vmatpush3.bf16.msra.mxu0 %v142_v3 }
   0x6   :  { %147 = vmatprep.subr.bf16.mxu0 %v146_v6 }
   0x9   :  { %149 = vmatpush3.bf16.msra.mxu0 %v146_v6 }
   0xc   :  { %140 = vmatmul.mubr.msk.f32.vlgmr.msra.gmra.mrb[0].mxu0 %vm30_vm0, %v18_v7 }
  0xdf   :  { %v141_v9 = vpop.f32.mrb[0].mxu0 }
  0xe0   :  { %v109_v11 = vadd.f32 %v141_v9, %v122_v8  ;;  %v103_v12 = vpop.f32.mrb[1].mxu0 }
  0xe1   :  { %v104_v14 = vadd.f32 %v122_v8, %v103_v12 }
  0xe2   :  { %v115_v15 = vadd.f32 %v113_v10, %v109_v11 }
  0xe3   :  { %v114_v16 = vadd.f32 %v112_v13, %v104_v14 }
  0xe4   :  { %117 = vst.msk [vmem:[%s216_s4 + $0x8] sm:$0xff] %vm30_vm0, %v115_v15 }
  0xe5   :  { %116 = vst.msk [vmem:[%s216_s4] sm:$0xff] %vm30_vm0, %v114_v16 }

// kernel: encoder_forward.10
= control target key start
LH: loop header
LB: loop body
LE: loop exit
PB: predicated region body
PF: predicated region fallthrough
CT: control target
= control target key end

     0   :  { %s917_s15 = smov 0   ;;  %s919_s16 = smov 0   ;;  %s995_s0 = inlined_call_operand.vmem [shape: f32[2,4,8,8], index: 0, kind: input, shape index: {}]   ;;  %s996_s1 = inlined_call_operand.vmem [shape: f32[2,4,8,8], index: 1, kind: input, shape index: {}]   ;;  %s997_s2 = inlined_call_operand.vmem [shape: f32[2,4,8,8], index: 2, kind: input, shape index: {}]   ;;  %s998_s3 = inlined_call_operand.vmem [shape: f32[2,1,8,8], index: 3, kind: input, shape index: {}]   ;;  %s999_s4 = inlined_call_operand.vmem [shape: f32[2,4,8,8], index: 4, kind: output, shape index: {}]  }
   0x1   :  { %s921_s17 = smov 0   ;;  %s923_s18 = smov 0  }
   0x2   :  { %s925_s19 = smov 0  }
   0x3 LB: > { %s36_s20 = sadd.s32 1, %s878_s17  ;;  %s40_s21 = sadd.s32 1, %s882_s18  ;;  %s886_s19 = sphi %s925_s19, %s14_s19   ;;  %s882_s18 = sphi %s923_s18, %s1003_s18   ;;  %s878_s17 = sphi %s921_s17, %s1002_s17   ;;  %s874_s16 = sphi %s919_s16, %s1001_s16   ;;  %s870_s15 = sphi %s917_s15, %s1000_s15  }
   0x4   : > { %p38_p0 = scmp.ge.s32.totalorder %s36_s20, 4  ;;  %p767_p1 = scmp.ge.s32.totalorder %s886_s19, 1 }
   0x5   : > { %p261_p2 = scmp.lt.s32.totalorder %s886_s19, 9 }
   0x6   : > { %s1005_s20 = smov (%p38_p0, %s36_s20), 0  ;;  %s1007_s21 = smov (!%p38_p0, %s40_s21), %s882_s18 }
   0x7   : > { %p262_p3 = pnand %p767_p1, %p261_p2  ;;  %p42_p4 = scmp.ge.s32.totalorder %s1007_s21, 2 }
   0x8   : > { %p331_p5 = scmp.lt.s32.totalorder (!%p262_p3), %s874_s16, 1  ;;  %p333_p6 = scmp.lt.s32.totalorder (!%p262_p3), %s870_s15, 3  ;;  %vm392_vm0 = vcmask (!%p262_p3), 64512   ;;  %v888_v0 = vmov (!%p262_p3), 0.0   ;;  %vm889_vm1 = vmmov (!%p262_p3), 0   ;;  %vm389_vm2 = vcmask (!%p262_p3), 7168  }
   0x9   : > { %s1009_s21 = smov (%p42_p4, %s1007_s21), 0  ;;  %265 = sbr.rel (%p262_p3) target bundleno = 821 (0x335), region = 36 }
   0xa   : > { %786 = vmatprep.subr.mxu0 (!%p262_p3), %v888_v0  ;;  %393 = vst.msk [vmem:[#allocation4] sm:$0xff] (!%p262_p3), %vm392_vm0, %v888_v0  ;;  %788 = vmatprep.mubr.msk.f32.mxu0 (!%p262_p3), %vm889_vm1, %v888_v0  ;;  %v890_v4 = vmov (!%p262_p3), -inf   ;;  %v891_v10 = vmov (!%p262_p3), 0  }
   0xb   : > { %791 = vmatprep.subr.mxu1 (!%p262_p3), %v888_v0  ;;  %793 = vmatprep.mubr.msk.f32.mxu1 (!%p262_p3), %vm889_vm1, %v888_v0  ;;  %390 = vst.msk [vmem:[#allocation2] sm:$0xff] (!%p262_p3), %vm389_vm2, %v890_v4  ;;  %391 = vst.msk [vmem:[#allocation3] sm:$0xff] (!%p262_p3), %vm389_vm2, %v888_v0 }
   0xc   : > { %840 = vset.pattern.permute.xlu0 (!%p262_p3), %v891_v10  ;;  %841 = vset.pattern.permute.xlu1 (!%p262_p3), %v891_v10 }
  0x10   : > { %s1011_s16 = smov (!%p331_p5, %s874_s16), 1  ;;  %s1013_s15 = smov (!%p333_p6, %s870_s15), 3 }
  0x11   : > { %s768_s22 = sshll.u32 %s1011_s16, 2  ;;  %s774_s5 = sshll.u32 %s1011_s16, 3  ;;  %v502_v28 = vld [vmem:[#allocation4] sm:$0xff] }
  0x12   : > { %s339_s23 = sadd.s32 %s768_s22, %s1013_s15  ;;  %s373_s8 = scalar_lea.vmem %s998_s3, %s774_s5  ;;  %v478_v11 = vld [vmem:[#allocation2] sm:$0xff]  ;;  %v494_v23 = vld [vmem:[#allocation3] sm:$0xff] }
  0x13   : > { %s948_s24 = sshll.u32 %s339_s23, 3  ;;  %v475_v5 = vld [vmem:[%s373_s8] sm:$0xff] }
  0x14   : > { %s352_s27 = scalar_lea.vmem %s996_s1, %s948_s24  ;;  %s341_s30 = scalar_lea.vmem %s995_s0, %s948_s24  ;;  %vm476_vm3 = vcmp.eq.f32.partialorder %v475_v5, 0.0 }
  0x15   : > { %v396_v1 = vld [vmem:[%s352_s27] sm:$0xff]  ;;  %s363_s11 = scalar_lea.vmem %s997_s2, %s948_s24  ;;  %s384_s14 = scalar_lea.vmem %s999_s4, %s948_s24 }
  0x16   : > { %787 = vmatpush3.xpose.msk.msra.mxu0 %vm392_vm0, %v396_v1  ;;  %v394_v2 = vld [vmem:[%s341_s30] sm:$0xff] }
  0x17   : > { %v395_v3 = vmul.f32 0.35355338, %v394_v2  ;;  %v397_v15 = vld [vmem:[%s363_s11] sm:$0xff] }
  0x18   : > { %792 = vmatpush3.msra.mxu1 %v397_v15 }
  0x19   : > { %789 = vmatmul.mubr.msk.f32.vlgmr.msra.gmra.mrb[0].mxu0 %vm392_vm0, %v395_v3 }
  0xec   : > { %v471_v6 = vpop.f32.mrb[0].mxu0 }
  0xed   : > { %v477_v7 = vsel %vm476_vm3, -1e+09, %v471_v6  ;;  %v790_v8 = vpop.f32.mrb[1].mxu0 }
  0xee   : > { %v479_v9 = vsel %vm392_vm0, %v477_v7, -inf }
  0xef   : > { %480 = vmax.xlane.f32.xlu0 %v479_v9 }
 0x17c   : > { %v481_v12 = vpop.xlane.xlu0 %480 }
 0x17d   : > { %v482_v13 = vmax.f32 %v478_v11, %v481_v12 }
 0x17f   : > { %v483_v14 = vsub.f32 %v478_v11, %v482_v13  ;;  %584 = vst.msk [vmem:[#allocation2] sm:$0xff] %vm389_vm2, %v482_v13  ;;  %488 = vperm.xlu0 %840, %v482_v13  }
 0x181   : > { %v484_v21 = vmul.f32 1.442695, %v483_v14 }
 0x1fe   : > { %v489_v16 = vpop.permute.xlu0 %488 }
 0x1ff   : > { %v491_v17 = vsub.f32 %v477_v7, %v489_v16 }
 0x201   : > { %v492_v18 = vmul.f32 1.442695, %v491_v17 }
 0x203   : > { %842 = vpow2.f32 %v492_v18 }
 0x204   : > { %844 = vpow2.f32 %v484_v21 }
 0x20d   : > { %v843_v19 = vpop.eup %842 }
 0x20e   : > { %794 = vmatmul.mubr.msk.f32.vlgmr.msra.gmra.mrb[0].mxu1 %vm392_vm0, %v843_v19  ;;  %v496_v20 = vsel %vm392_vm0, %v843_v19, 0.0  ;;  %v845_v22 = vpop.eup %844 }
 0x20f   : > { %497 = vadd.xlane.f32.xlu1 %v496_v20  ;;  %v495_v24 = vmul.f32 %v845_v22, %v494_v23 }
 0x220   : > { %505 = vperm.xlu1 %841, %v845_v22  }
 0x29c   : > { %v498_v25 = vpop.xlane.xlu1 %497 }
 0x29d   : > { %v499_v26 = vadd.f32 %v498_v25, %v495_v24 }
 0x29f   : > { %501 = vst.msk [vmem:[#allocation3] sm:$0xff] %vm389_vm2, %v499_v26 }
 0x2a0   : > { %v506_v29 = vpop.permute.xlu1 %505 }
 0x2a1   : > { %v508_v30 = vmul.f32 %v506_v29, %v502_v28 }
 0x2a6   : > { %v589_v27 = vld [vmem:[#allocation3] sm:$0xff] }
 0x2a7   : > { %592 = vperm.xlu1 %841, %v589_v27  }
 0x2e1   : > { %v578_v31 = vpop.f32.mrb[0].mxu1 }
 0x2e2   : > { %v582_v32 = vadd.f32 %v578_v31, %v508_v30  ;;  %v795_v33 = vpop.f32.mrb[1].mxu1 }
 0x2e4   : > { %583 = vst.msk [vmem:[#allocation4] sm:$0xff] %vm392_vm0, %v582_v32 }
 0x2eb   : > { %v588_v36 = vld [vmem:[#allocation4] sm:$0xff] }
 0x326   : > { %v593_v34 = vpop.permute.xlu1 %592 }
 0x327   : > { %846 = vrcp.f32 %v593_v34 }
 0x331   : > { %v847_v35 = vpop.eup %846 }
 0x332   : > { %v596_v37 = vmul.f32 %v847_v35, %v588_v36 }
 0x334   : > { %597 = vst.msk [vmem:[%s384_s14] sm:$0xff] %vm392_vm0, %v596_v37 }
 0x335 PF: > { %s14_s19 = sadd.s32 1, %s886_s19   ;;  %s1000_s15 = smov %s878_s17 }
 0x336   : > { %p11_p7 = scmp.ge.s32.totalorder %s14_s19, 10   ;;  %s1001_s16 = smov %s882_s18 }
 0x337   : > { %s1002_s17 = smov %s1005_s20  ;;  %s1003_s18 = smov %s1009_s21 }
 0x338   :  { %13 = sbr.rel (!%p11_p7) target bundleno = 3 (0x3), region = 83 }

// kernel: encoder_forward.12
= control target key start
LH: loop header
LB: loop body
LE: loop exit
PB: predicated region body
PF: predicated region fallthrough
CT: control target
= control target key end

     0   :  { %vm30_vm0 = vcmask 261120   ;;  %vm183_vm1 = vcmask 523264   ;;  %s473_s0 = inlined_call_operand.vmem [shape: f32[16,32], index: 0, kind: input, shape index: {}]   ;;  %s474_s3 = inlined_call_operand.vmem [shape: f32[32,64], index: 3, kind: input, shape index: {}]   ;;  %s475_s5 = inlined_call_operand.vmem [shape: f32[64,32], index: 5, kind: input, shape index: {}]   ;;  %s476_s1 = inlined_call_operand.vmem [shape: f32[1,32], index: 1, kind: input, shape index: {}]   ;;  %s477_s2 = inlined_call_operand.vmem [shape: f32[1,32], index: 2, kind: input, shape index: {}]   ;;  %s478_s4 = inlined_call_operand.vmem [shape: f32[1,64], index: 4, kind: input, shape index: {}]   ;;  %s479_s6 = inlined_call_operand.vmem [shape: f32[1,32], index: 6, kind: input, shape index: {}]   ;;  %s480_s7 = inlined_call_operand.vmem [shape: f32[16,32], index: 7, kind: output, shape index: {}]  }
   0x1   :  { %v398_v0 = vld [vmem:[%s473_s0] sm:$0xff]  ;;  %v403_v1 = vld [vmem:[%s473_s0 + $0x8] sm:$0xff]  ;;  %v76_v16 = vld [vmem:[%s474_s3 + $0x10] sm:$0xff] }
   0x2   :  { %v31_v2 = vsel %vm30_vm0, %v398_v0, 0.0  ;;  %v34_v3 = vsel %vm30_vm0, %v403_v1, 0.0  ;;  %v74_v14 = vld [vmem:[%s474_s3] sm:$0xff]  ;;  %v75_v15 = vld [vmem:[%s474_s3 + $0x8] sm:$0xff]  ;;  %v77_v18 = vld [vmem:[%s474_s3 + $0x18] sm:$0xff] }
   0x3   :  { %32 = vadd.xlane.f32.xlu0 %v31_v2  ;;  %v327_v17 = vpack.c.bf16 %v75_v15, %v74_v14  ;;  %v331_v19 = vpack.c.bf16 %v77_v18, %v76_v16  ;;  %v168_v20 = vld [vmem:[%s475_s5] sm:$0xff]  ;;  %v169_v21 = vld [vmem:[%s475_s5 + $0x8] sm:$0xff]  ;;  %v170_v22 = vld [vmem:[%s475_s5 + $0x10] sm:$0xff] }
   0x4   :  { %v335_v23 = vpack.c.bf16 %v169_v21, %v168_v20  ;;  %v171_v24 = vld [vmem:[%s475_s5 + $0x18] sm:$0xff]  ;;  %v172_v26 = vld [vmem:[%s475_s5 + $0x20] sm:$0xff]  ;;  %v173_v27 = vld [vmem:[%s475_s5 + $0x28] sm:$0xff] }
   0x5   :  { %328 = vmatprep.subr.bf16.mxu0 %v327_v17  ;;  %v339_v25 = vpack.c.bf16 %v171_v24, %v170_v22  ;;  %v343_v28 = vpack.c.bf16 %v173_v27, %v172_v26  ;;  %v273_v36 = vld [vmem:[%s476_s1] ss:$0 sm:$0xff]  ;;  %v174_v45 = vld [vmem:[%s475_s5 + $0x30] sm:$0xff]  ;;  %v175_v46 = vld [vmem:[%s475_s5 + $0x38] sm:$0xff] }
   0x6   :  { %330 = vmatpush3.bf16.msra.mxu0 %v327_v17  ;;  %336 = vmatprep.subr.bf16.mxu1 %v335_v23  ;;  %v274_v38 = vld [vmem:[%s477_s2] ss:$0 sm:$0xff]  ;;  %v347_v47 = vpack.c.bf16 %v175_v46, %v174_v45 }
   0x7   :  { %35 = vadd.xlane.f32.xlu0 %v34_v3  ;;  %332 = vmatprep.subr.bf16.mxu0 %v331_v19  ;;  %v275_v48 = vld [vmem:[%s478_s4] ss:$0 sm:$0xff] }
   0x8   :  { %338 = vmatpush3.bf16.msra.mxu1 %v335_v23  ;;  %v278_v55 = vld [vmem:[%s479_s6] ss:$0 sm:$0xff] }
   0x9   :  { %340 = vmatprep.subr.bf16.mxu1 %v339_v25 }
   0xa   :  { %334 = vmatpush3.bf16.msra.mxu0 %v331_v19 }
   0xc   :  { %342 = vmatpush3.bf16.msra.mxu1 %v339_v25 }
   0xd   :  { %344 = vmatprep.subr.bf16.mxu1 %v343_v28 }
  0x10   :  { %346 = vmatpush3.bf16.msra.mxu1 %v343_v28 }
  0x11   :  { %348 = vmatprep.subr.bf16.mxu1 %v347_v47 }
  0x14   :  { %350 = vmatpush3.bf16.msra.mxu1 %v347_v47 }
  0x90   :  { %v33_v4 = vpop.xlane.xlu0 %32 }
  0x91   :  { %v38_v5 = vmul.f32 0.03125, %v33_v4 }
  0x93   :  { %v40_v6 = vsub.f32 %v398_v0, %v38_v5 }
  0x94   :  { %v36_v7 = vpop.xlane.xlu0 %35 }
  0x95   :  { %v39_v8 = vmul.f32 0.03125, %v36_v7  ;;  %v42_v9 = vmul.f32 %v40_v6, %v40_v6 }
  0x97   :  { %v41_v10 = vsub.f32 %v403_v1, %v39_v8  ;;  %v44_v11 = vsel %vm30_vm0, %v42_v9, 0.0 }
  0x98   :  { %45 = vadd.xlane.f32.xlu1 %v44_v11 }
  0x99   :  { %v43_v12 = vmul.f32 %v41_v10, %v41_v10 }
  0x9b   :  { %v47_v13 = vsel %vm30_vm0, %v43_v12, 0.0 }
  0x9c   :  { %48 = vadd.xlane.f32.xlu1 %v47_v13 }
 0x125   :  { %v46_v29 = vpop.xlane.xlu1 %45 }
 0x126   :  { %v50_v30 = vmul.f32 0.03125, %v46_v29 }
 0x128   :  { %v52_v31 = vadd.f32 1e-05, %v50_v30 }
 0x129   :  { %v49_v32 = vpop.xlane.xlu1 %48 }
 0x12a   :  { %351 = vrsqrt.f32 %v52_v31  ;;  %v51_v33 = vmul.f32 0.03125, %v49_v32 }
 0x12c   :  { %v53_v34 = vadd.f32 1e-05, %v51_v33 }
 0x12e   :  { %353 = vrsqrt.f32 %v53_v34 }
 0x134   :  { %v352_v35 = vpop.eup %351 }
 0x135   :  { %v56_v37 = vmul.f32 %v352_v35, %v40_v6 }
 0x137   :  { %v64_v39 = vmul.f32 %v273_v36, %v56_v37 }
 0x138   :  { %v354_v40 = vpop.eup %353 }
 0x139   :  { %v57_v41 = vmul.f32 %v354_v40, %v41_v10  ;;  %v72_v42 = vadd.f32 %v274_v38, %v64_v39 }
 0x13b   :  { %v65_v43 = vmul.f32 %v273_v36, %v57_v41  ;;  %305 = vmatprep.mubr.msk.f32.mxu0 %vm30_vm0, %v72_v42 }
 0x13d   :  { %v73_v44 = vadd.f32 %v274_v38, %v65_v43 }
 0x13f   :  { %306 = vmatmul.mubr.msk.f32.vlgmr.msra.gmra.mrb[0].mxu0 %vm30_vm0, %v73_v44 }
 0x212   :  { %v307_v49 = vpop.f32.mrb[0].mxu0 }
 0x213   :  { %v163_v50 = vadd.f32 %v307_v49, %v275_v48  ;;  %v157_v51 = vpop.f32.mrb[1].mxu0 }
 0x214   :  { %v158_v52 = vadd.f32 %v275_v48, %v157_v51 }
 0x215   :  { %v167_v54 = vmax.f32 %v163_v50, 0.0 }
 0x216   :  { %v166_v53 = vmax.f32 %v158_v52, 0.0 }
 0x218   :  { %324 = vmatprep.mubr.msk.f32.mxu1 %vm183_vm1, %v166_v53 }
 0x219   :  { %325 = vmatmul.mubr.msk.f32.vlgmr.msra.gmra.mrb[0].mxu1 %vm183_vm1, %v167_v54 }
 0x2ec   :  { %v326_v56 = vpop.f32.mrb[0].mxu1 }
 0x2ed   :  { %v262_v57 = vadd.f32 %v326_v56, %v278_v55  ;;  %v256_v58 = vpop.f32.mrb[1].mxu1 }
 0x2ee   :  { %v257_v59 = vadd.f32 %v278_v55, %v256_v58 }
 0x2ef   :  { %v266_v60 = vadd.f32 %v262_v57, %v403_v1 }
 0x2f0   :  { %v265_v61 = vadd.f32 %v257_v59, %v398_v0 }
 0x2f1   :  { %268 = vst.msk [vmem:[%s480_s7 + $0x8] sm:$0xff] %vm30_vm0, %v266_v60 }
 0x2f2   :  { %267 = vst.msk [vmem:[%s480_s7] sm:$0xff] %vm30_vm0, %v265_v61 }

// kernel: encoder_forward.17
= control target key start
LH: loop header
LB: loop body
LE: loop exit
PB: predicated region body
PF: predicated region fallthrough
CT: control target
= control target key end

     0   :  { %vm19_vm0 = vcmask 261120   ;;  %s167_s0 = inlined_call_operand.vmem [shape: f32[16,32], index: 0, kind: input, shape index: {}]   ;;  %s168_s1 = inlined_call_operand.vmem [shape: f32[1,32], index: 1, kind: input, shape index: {}]   ;;  %s169_s2 = inlined_call_operand.vmem [shape: f32[1,32], index: 2, kind: input, shape index: {}]   ;;  %s170_s3 = inlined_call_operand.hbm [shape: f32[16,32], index: 3, kind: output, shape index: {}]  }
   0x1   :  { %v15_v0 = vld [vmem:[%s167_s0] sm:$0xff]  ;;  %v16_v1 = vld [vmem:[%s167_s0 + $0x8] sm:$0xff] }
   0x2   :  { %8 = vsyncpa [#allocation3], 0  ;;  %v20_v2 = vsel %vm19_vm0, %v15_v0, 0.0  ;;  %v23_v3 = vsel %vm19_vm0, %v16_v1, 0.0  ;;  %v81_v21 = vld [vmem:[%s168_s1] ss:$0 sm:$0xff] }
   0x3   :  { %21 = vadd.xlane.f32.xlu0 %v20_v2  ;;  %v82_v23 = vld [vmem:[%s169_s2] ss:$0 sm:$0xff]  ;;  %s114_s19 = smov [#allocation2]  }
   0x4   :  { %s70_s20 = sshll.u32 %s114_s19, 4  ;;  %s71_s20 = int_to_ptr.vmem [resolvable:$true] %s70_s20 }
   0x5   :  { %s90_s21 = scalar_lea.vmem %s71_s20, 256  ;;  %p95_p1 = scmp.lt.s32.totalorder %s71_s20, %s71_s20 }
   0x6   :  { %p91_p0 = scmp.ne.s32.totalorder %s71_s20, %s90_s21  ;;  %p96_p2 = scmp.lt.s32.totalorder %s90_s21, %s90_s21 }
   0x7   :  { %24 = vadd.xlane.f32.xlu0 %v23_v3 }
   0x8   :  { %p97_p3 = por %p96_p2, %p95_p1 }
   0xa   :  { %p98_p4 = pnand %p97_p3, %p91_p0 }
  0x90   :  { %v22_v4 = vpop.xlane.xlu0 %21 }
  0x91   :  { %v27_v5 = vmul.f32 0.03125, %v22_v4 }
  0x93   :  { %v29_v6 = vsub.f32 %v15_v0, %v27_v5 }
  0x94   :  { %v25_v7 = vpop.xlane.xlu0 %24 }
  0x95   :  { %v28_v8 = vmul.f32 0.03125, %v25_v7  ;;  %v31_v9 = vmul.f32 %v29_v6, %v29_v6 }
  0x97   :  { %v30_v10 = vsub.f32 %v16_v1, %v28_v8  ;;  %v33_v11 = vsel %vm19_vm0, %v31_v9, 0.0 }
  0x98   :  { %34 = vadd.xlane.f32.xlu1 %v33_v11 }
  0x99   :  { %v32_v12 = vmul.f32 %v30_v10, %v30_v10 }
  0x9b   :  { %v36_v13 = vsel %vm19_vm0, %v32_v12, 0.0 }
  0x9c   :  { %37 = vadd.xlane.f32.xlu1 %v36_v13 }
 0x125   :  { %v35_v14 = vpop.xlane.xlu1 %34 }
 0x126   :  { %v39_v15 = vmul.f32 0.03125, %v35_v14 }
 0x128   :  { %v41_v16 = vadd.f32 1e-05, %v39_v15 }
 0x129   :  { %v38_v17 = vpop.xlane.xlu1 %37 }
 0x12a   :  { %86 = vrsqrt.f32 %v41_v16  ;;  %v40_v18 = vmul.f32 0.03125, %v38_v17 }
 0x12c   :  { %v42_v19 = vadd.f32 1e-05, %v40_v18 }
 0x12e   :  { %88 = vrsqrt.f32 %v42_v19 }
 0x134   :  { %v87_v20 = vpop.eup %86 }
 0x135   :  { %v45_v22 = vmul.f32 %v87_v20, %v29_v6 }
 0x137   :  { %v53_v24 = vmul.f32 %v81_v21, %v45_v22 }
 0x138   :  { %v89_v25 = vpop.eup %88 }
 0x139   :  { %v46_v26 = vmul.f32 %v89_v25, %v30_v10  ;;  %v61_v27 = vadd.f32 %v82_v23, %v53_v24 }
 0x13b   :  { %v54_v28 = vmul.f32 %v81_v21, %v46_v26  ;;  %63 = vst.msk [vmem:[#allocation2] sm:$0xff] %vm19_vm0, %v61_v27 }
 0x13d   :  { %v62_v29 = vadd.f32 %v82_v23, %v54_v28 }
 0x13f   :  { %64 = vst.msk [vmem:[#allocation2 + $0x8] sm:$0xff] %vm19_vm0, %v62_v29 }
 0x140   :  { %101 = shalt.err (!%p98_p4)
}
 0x141   :  { %s102_s22 = scalar_lea.hbm %s170_s3, 256 }
 0x142   :  { %p103_p5 = scmp.ne.s32.totalorder %s170_s3, %s102_s22  ;;  %p106_p6 = scmp.lt.u32.totalorder %s102_s22, %s170_s3 }
 0x144   :  { %p108_p7 = pnand %p106_p6, %p103_p5 }
 0x146   :  { %111 = shalt.err (!%p108_p7)
}
 0x147   :  { %s115_s27 = smov 128   ;;  %s116_s28 = smov 8  }
 0x148   :  { %76 = dma.vmem_to_hbm [thread:$0]  %s71_s20, 256, %s170_s3, [#allocation3], %s115_s27, %s115_s27, %s116_s28  }
 0x149   :  { %112 = dma.done.wait [#allocation3], 256  }
 0x14a   :  { %113 = vsyncadd [#allocation3], 4294967040 }
 0x14b   :  { %80 = vsyncpa [#allocation3], 1 }

</bundles_post_ra>
